<compile_context>
chip_gen: v5e
topology: v5e:2x2
jax: 0.10.0
libtpu: 0.0.40
codegen_flags: <defaults>
</compile_context>

<pallas_src>
import functools

import jax
import jax.numpy as jnp
from jax.experimental import pallas as pl
from jax.experimental.pallas import tpu as pltpu


def _nce_kernel(pred_ref, labels_ref, out_ref, acc_ref, *, scale, n_rows, tile_n):
    step = pl.program_id(0)

    @pl.when(step == 0)
    def _():
        acc_ref[...] = jnp.zeros_like(acc_ref)

    pred = pred_ref[...].astype(jnp.float32)        # (tile_n, C) — cast per tile
    labels = labels_ref[...]                        # (tile_n, 1) int32
    num_classes = pred.shape[1]

    # Stable log-softmax pieces (logp = shifted - lse is never materialized).
    m = jnp.max(pred, axis=1, keepdims=True)        # (tile_n, 1)
    shifted = pred - m                              # (tile_n, C)
    lse = jnp.log(jnp.sum(jnp.exp(shifted), axis=1, keepdims=True))  # (tile_n, 1)

    # one_hot gather via iota-compare; g = shifted[label], t = sum_j shifted_j.
    class_ids = jax.lax.broadcasted_iota(jnp.int32, shifted.shape, 1)
    onehot = (class_ids == labels).astype(jnp.float32)
    g = jnp.sum(onehot * shifted, axis=1, keepdims=True)             # (tile_n, 1)
    t = jnp.sum(shifted, axis=1, keepdims=True)                      # (tile_n, 1)

    numer = lse - g                                  # = -logp[label]
    denom = jnp.float32(num_classes) * lse - t       # = -sum_j logp_j

    # Mask rows of the last (padded) tile that lie beyond the true batch size.
    row_ids = step * tile_n + jax.lax.broadcasted_iota(jnp.int32, (tile_n, 1), 0)
    valid = row_ids < n_rows
    denom = jnp.where(valid, denom, jnp.float32(1.0))
    nce = jnp.where(valid, numer * pl.reciprocal(denom, approx=True),
                    jnp.float32(0.0))                # (tile_n, 1)

    acc_ref[...] += jnp.sum(nce, keepdims=True)      # running sum over all rows

    @pl.when(step == pl.num_programs(0) - 1)
    def _():
        out_ref[...] = acc_ref[...] * jnp.float32(scale / n_rows)


def _choose_tile_n(n, c, itemsize, target_bytes=2 * 1024 * 1024):
    """Pick a batch-tile size: ~2 MiB of pred per tile, multiple of 8, <= n."""
    if n <= 8:
        return n
    t = max(8, min(n, target_bytes // max(1, c * itemsize)))
    t = max(8, (t // 8) * 8)
    return n if t >= n else t


def normalized_cross_entropy(pred, labels, *, num_classes, scale=1.0, tile_n=None):
    """pred: (N, C) float, labels: (N,) int. Returns scalar f32."""
    N, C = pred.shape
    assert C == num_classes
    labels2d = labels.astype(jnp.int32).reshape(N, 1)

    if tile_n is None:
        tile_n = _choose_tile_n(N, C, pred.dtype.itemsize)
    # Block-shape constraint: second-to-last dim must be a multiple of 8 or
    # equal to the full array extent.
    assert tile_n == N or tile_n % 8 == 0

    grid = (pl.cdiv(N, tile_n),)
    kernel = functools.partial(
        _nce_kernel, scale=float(scale), n_rows=N, tile_n=tile_n)

    out = pl.pallas_call(
        kernel,
        out_shape=jax.ShapeDtypeStruct((1, 1), jnp.float32),
        grid=grid,
        in_specs=[
            pl.BlockSpec((tile_n, C), lambda i: (i, 0)),
            pl.BlockSpec((tile_n, 1), lambda i: (i, 0)),
        ],
        # Constant index_map: output block stays resident, written back once.
        out_specs=pl.BlockSpec((1, 1), lambda i: (0, 0)),
        scratch_shapes=[pltpu.VMEM((1, 1), jnp.float32)],
        compiler_params=pltpu.CompilerParams(
            dimension_semantics=("arbitrary",)),
    )(pred, labels2d)
    return out[0, 0]


def _reference(pred, labels, num_classes, scale=1.0):
    # Plain-JAX reference mirroring the PyTorch forward.
    logp = jax.nn.log_softmax(pred.astype(jnp.float32), axis=1)
    onehot = jax.nn.one_hot(labels, num_classes, dtype=jnp.float32)
    nce = -jnp.sum(onehot * logp, axis=1) / -jnp.sum(logp, axis=1)
    return scale * jnp.mean(nce)


if __name__ == "__main__":
    key = jax.random.PRNGKey(0)
    k1, k2, k3, k4 = jax.random.split(key, 4)

    # Case 1: small batch, single tile.
    N, C = 8, 32
    scale = 1.0
    pred = jax.random.normal(k1, (N, C), dtype=jnp.float32)
    labels = jax.random.randint(k2, (N,), 0, C, dtype=jnp.int32)

    out = normalized_cross_entropy(pred, labels, num_classes=C, scale=scale)
    out = jax.block_until_ready(out)
    ref = _reference(pred, labels, C, scale)
    assert jnp.allclose(out, ref, atol=1e-3, rtol=1e-3), (out, ref)

    # Case 2: multi-tile path with a ragged last tile (exercises masking).
    N2, C2 = 20, 32
    scale2 = 2.0
    pred2 = jax.random.normal(k3, (N2, C2), dtype=jnp.float32)
    labels2 = jax.random.randint(k4, (N2,), 0, C2, dtype=jnp.int32)

    out2 = normalized_cross_entropy(pred2, labels2, num_classes=C2,
                                    scale=scale2, tile_n=8)
    out2 = jax.block_until_ready(out2)
    ref2 = _reference(pred2, labels2, C2, scale2)
    assert jnp.allclose(out2, ref2, atol=1e-3, rtol=1e-3), (out2, ref2)

    print("KERNEL_OK")
</pallas_src>

<mosaic_0001>
module attributes {stable_mosaic.version = 11 : i64} {
  func.func @_nce_kernel(%arg0: i32, %arg1: memref<8x32xf32, #tpu.memory_space<vmem>>, %arg2: memref<8x1xi32, #tpu.memory_space<vmem>>, %arg3: memref<1x1xf32, #tpu.memory_space<vmem>>, %arg4: memref<1x1xf32, #tpu.memory_space<vmem>>) attributes {dimension_semantics = [#tpu.dimension_semantics<arbitrary>], iteration_bounds = array<i64: 1>, scalar_prefetch = 0 : i64, scratch_operands = 1 : i64, tpu.core_type = #tpu.core_type<tc>, window_params = [{transform_indices = @transform_0, window_bounds = array<i64: 8, 32>}, {transform_indices = @transform_1, window_bounds = array<i64: 8, 1>}, {pipeline_mode = #tpu.pipeline_mode<synchronous>, transform_indices = @transform_2, window_bounds = array<i64: 1, 1>}]} {
    %c0_i32 = arith.constant 0 : i32
    %0 = arith.cmpi eq, %arg0, %c0_i32 : i32
    %1 = arith.extui %0 : i1 to i32
    %c0_i32_0 = arith.constant 0 : i32
    %2 = arith.cmpi ne, %1, %c0_i32_0 : i32
    scf.if %2 {
      %cst_18 = arith.constant 0.000000e+00 : f32
      %50 = vector.broadcast %cst_18 : f32 to vector<1x1xf32>
      %c0_19 = arith.constant 0 : index
      %c0_20 = arith.constant 0 : index
      %51 = vector.load %arg4[%c0_19, %c0_20] : memref<1x1xf32, #tpu.memory_space<vmem>>, vector<1x1xf32>
      tpu.vector_store %arg4[%c0_19, %c0_20], %50 {strides = array<i32>} : memref<1x1xf32, #tpu.memory_space<vmem>>, vector<1x1xf32>,
    } else {
    }
    %c0 = arith.constant 0 : index
    %c0_1 = arith.constant 0 : index
    %3 = vector.load %arg1[%c0, %c0_1] : memref<8x32xf32, #tpu.memory_space<vmem>>, vector<8x32xf32>
    %c0_2 = arith.constant 0 : index
    %c0_3 = arith.constant 0 : index
    %4 = vector.load %arg2[%c0_2, %c0_3] : memref<8x1xi32, #tpu.memory_space<vmem>>, vector<8x1xi32>
    %cst = arith.constant dense<0xFF800000> : vector<8xf32>
    %5 = vector.multi_reduction <maximumf>, %3, %cst [1] : vector<8x32xf32> to vector<8xf32>
    %6 = vector.shape_cast %5 : vector<8xf32> to vector<8x1xf32>
    %7 = vector.broadcast %6 : vector<8x1xf32> to vector<8x32xf32>
    %8 = arith.subf %3, %7 : vector<8x32xf32>
    %9 = math.exp %8 : vector<8x32xf32>
    %cst_4 = arith.constant dense<0.000000e+00> : vector<8xf32>
    %10 = vector.multi_reduction <add>, %9, %cst_4 [1] : vector<8x32xf32> to vector<8xf32>
    %11 = vector.shape_cast %10 : vector<8xf32> to vector<8x1xf32>
    %12 = math.log %11 : vector<8x1xf32>
    %13 = tpu.iota {dimensions = array<i32: 1>} : vector<8x32xi32>
    %14 = vector.broadcast %4 : vector<8x1xi32> to vector<8x32xi32>
    %15 = arith.cmpi eq, %13, %14 : vector<8x32xi32>
    %16 = arith.extui %15 : vector<8x32xi1> to vector<8x32xi32>
    %17 = arith.sitofp %16 : vector<8x32xi32> to vector<8x32xf32>
    %18 = arith.mulf %17, %8 : vector<8x32xf32>
    %cst_5 = arith.constant dense<0.000000e+00> : vector<8xf32>
    %19 = vector.multi_reduction <add>, %18, %cst_5 [1] : vector<8x32xf32> to vector<8xf32>
    %20 = vector.shape_cast %19 : vector<8xf32> to vector<8x1xf32>
    %cst_6 = arith.constant dense<0.000000e+00> : vector<8xf32>
    %21 = vector.multi_reduction <add>, %8, %cst_6 [1] : vector<8x32xf32> to vector<8xf32>
    %22 = vector.shape_cast %21 : vector<8xf32> to vector<8x1xf32>
    %23 = arith.subf %12, %20 : vector<8x1xf32>
    %cst_7 = arith.constant 3.200000e+01 : f32
    %24 = vector.broadcast %cst_7 : f32 to vector<8x1xf32>
    %25 = arith.mulf %24, %12 : vector<8x1xf32>
    %26 = arith.subf %25, %22 : vector<8x1xf32>
    %c8_i32 = arith.constant 8 : i32
    %27 = arith.muli %arg0, %c8_i32 : i32
    %28 = tpu.iota {dimensions = array<i32: 0>} : vector<8x1xi32>
    %29 = vector.broadcast %27 : i32 to vector<8x1xi32>
    %30 = arith.addi %29, %28 : vector<8x1xi32>
    %c8_i32_8 = arith.constant 8 : i32
    %31 = vector.broadcast %c8_i32_8 : i32 to vector<8x1xi32>
    %32 = arith.cmpi slt, %30, %31 : vector<8x1xi32>
    %cst_9 = arith.constant 1.000000e+00 : f32
    %33 = vector.broadcast %cst_9 : f32 to vector<8x1xf32>
    %34 = arith.select %32, %26, %33 : vector<8x1xi1>, vector<8x1xf32>
    %35 = tpu.reciprocal %34 {approx = true} : vector<8x1xf32> -> vector<8x1xf32>
    %36 = arith.mulf %23, %35 : vector<8x1xf32>
    %cst_10 = arith.constant 0.000000e+00 : f32
    %37 = vector.broadcast %cst_10 : f32 to vector<8x1xf32>
    %38 = arith.select %32, %36, %37 : vector<8x1xi1>, vector<8x1xf32>
    %c0_11 = arith.constant 0 : index
    %c0_12 = arith.constant 0 : index
    %39 = vector.load %arg4[%c0_11, %c0_12] : memref<1x1xf32, #tpu.memory_space<vmem>>, vector<1x1xf32>
    %40 = vector.shape_cast %38 : vector<8x1xf32> to vector<1x8x1xf32>
    %cst_13 = arith.constant dense<0.000000e+00> : vector<1xf32>
    %41 = vector.multi_reduction <add>, %40, %cst_13 [1, 2] : vector<1x8x1xf32> to vector<1xf32>
    %42 = vector.shape_cast %41 : vector<1xf32> to vector<1x1x1xf32>
    %43 = vector.extract %42[0, 0, 0] : f32 from vector<1x1x1xf32>
    %44 = vector.broadcast %43 : f32 to vector<1x1xf32>
    %45 = arith.addf %39, %44 : vector<1x1xf32>
    %c0_14 = arith.constant 0 : index
    %c0_15 = arith.constant 0 : index
    %46 = vector.load %arg4[%c0_14, %c0_15] : memref<1x1xf32, #tpu.memory_space<vmem>>, vector<1x1xf32>
    tpu.vector_store %arg4[%c0_14, %c0_15], %45 {strides = array<i32>} : memref<1x1xf32, #tpu.memory_space<vmem>>, vector<1x1xf32>,
    %c0_i32_16 = arith.constant 0 : i32
    %47 = arith.cmpi eq, %arg0, %c0_i32_16 : i32
    %48 = arith.extui %47 : i1 to i32
    %c0_i32_17 = arith.constant 0 : i32
    %49 = arith.cmpi ne, %48, %c0_i32_17 : i32
    scf.if %49 {
      %c0_18 = arith.constant 0 : index
      %c0_19 = arith.constant 0 : index
      %50 = vector.load %arg4[%c0_18, %c0_19] : memref<1x1xf32, #tpu.memory_space<vmem>>, vector<1x1xf32>
      %cst_20 = arith.constant 1.250000e-01 : f32
      %51 = vector.broadcast %cst_20 : f32 to vector<1x1xf32>
      %52 = arith.mulf %50, %51 : vector<1x1xf32>
      %c0_21 = arith.constant 0 : index
      %c0_22 = arith.constant 0 : index
      %53 = vector.load %arg3[%c0_21, %c0_22] : memref<1x1xf32, #tpu.memory_space<vmem>>, vector<1x1xf32>
      tpu.vector_store %arg3[%c0_21, %c0_22], %52 {strides = array<i32>} : memref<1x1xf32, #tpu.memory_space<vmem>>, vector<1x1xf32>,
    } else {
    }
    return
  }
  func.func @transform_0(%arg0: i32) -> (i32, i32) {
    %c0_i32 = arith.constant 0 : i32
    %c0_i32_0 = arith.constant 0 : i32
    return %arg0, %c0_i32 : i32, i32
  }
  func.func @transform_1(%arg0: i32) -> (i32, i32) {
    %c0_i32 = arith.constant 0 : i32
    %c0_i32_0 = arith.constant 0 : i32
    return %arg0, %c0_i32 : i32, i32
  }
  func.func @transform_2(%arg0: i32) -> (i32, i32) {
    %c0_i32 = arith.constant 0 : i32
    %c0_i32_0 = arith.constant 0 : i32
    %c0_i32_1 = arith.constant 0 : i32
    return %c0_i32, %c0_i32_0 : i32, i32
  }
}

</mosaic_0001>

<bundles_post_ra>
// kernel: tpu_custom_call.1
= control target key start
LH: loop header
LB: loop body
LE: loop exit
PB: predicated region body
PF: predicated region fallthrough
CT: control target
= control target key end

     0   :  { %vm20_vm0 = vcmask 261120   ;;  %s171_s0 = inlined_call_operand.vmem [shape: f32[8,32], index: 0, kind: input, shape index: {}]   ;;  %s172_s1 = inlined_call_operand.vmem [shape: s32[8,1], index: 1, kind: input, shape index: {}]   ;;  %s173_s2 = inlined_call_operand.hbm [shape: f32[1,1], index: 2, kind: output, shape index: {}]  }
   0x1   :  { %v18_v0 = vld [vmem:[%s171_s0] sm:$0xff] }
   0x2   :  { %7 = vsyncpa [#allocation4], 0  ;;  %v21_v1 = vsel %vm20_vm0, %v18_v0, -inf  ;;  %v137_v2 = vmov 0   ;;  %v19_v3 = vld [vmem:[%s172_s1] sm:$0xff]  ;;  %vm16_vm1 = vcmask 0   ;;  %v32_v10 = vlaneseq }
   0x3   :  { %104 = vset.pattern.permute.xlu0 %v137_v2  ;;  %v138_v4 = vmov 0.0   ;;  %vm61_vm3 = vcmask 7168   ;;  %s139_s1 = smov [#allocation3]   ;;  %s89_s16 = sshll.u32 %s173_s2, 4  ;;  %s90_s16 = int_to_ptr.hbm [resolvable:$true] %s89_s16 }
   0x4   :  { %22 = vmax.xlane.f32.xlu0 %v21_v1  ;;  %17 = vst.msk [vmem:[#allocation2] sm:$0x1] %vm16_vm1, %v138_v4  ;;  %v33_v11 = vand.u32 127, %v32_v10  ;;  %s87_s13 = sshll.u32 %s139_s1, 4  ;;  %s88_s13 = int_to_ptr.vmem [resolvable:$true] %s87_s13 }
   0xb   :  { %v60_v35 = vld [vmem:[#allocation2] sm:$0x1] }
  0x18   :  { %35 = vperm.xlu0 %104, %v19_v3  }
  0x77   :  { %v23_v5 = vpop.xlane.xlu0 %22 }
  0x78   :  { %v24_v6 = vsub.f32 %v18_v0, %v23_v5 }
  0x7a   :  { %v25_v7 = vmul.f32 1.442695, %v24_v6  ;;  %v44_v13 = vsel %vm20_vm0, %v24_v6, 0.0 }
  0x7c   :  { %105 = vpow2.f32 %v25_v7 }
  0x82   :  { %v106_v8 = vpop.eup %105 }
  0x83   :  { %v27_v9 = vsel %vm20_vm0, %v106_v8, 0.0 }
  0x84   :  { %28 = vadd.xlane.f32.xlu1 %v27_v9 }
  0x8a   :  { %v36_v12 = vpop.permute.xlu0 %35 }
  0x8b   :  { %vm37_vm2 = vcmp.eq.s32.totalorder %v33_v11, %v36_v12 }
  0x8c   :  { %v98_v14 = vsel %vm37_vm2, 1.0, %v138_v4  ;;  %45 = vadd.xlane.f32.xlu1 %v44_v13 }
  0x8d   :  { %v40_v15 = vmul.f32 %v98_v14, %v24_v6 }
  0x8f   :  { %v41_v16 = vsel %vm20_vm0, %v40_v15, 0.0 }
  0x90   :  { %42 = vadd.xlane.f32.xlu2 %v41_v16 }
  0xf7   :  { %v29_v17 = vpop.xlane.xlu1 %28 }
  0xf8   :  { %107 = vlog2.f32 %v29_v17 }
  0xfe   :  { %v108_v18 = vpop.eup %107 }
  0xff   :  { %v31_v19 = vmul.f32 0.6931472, %v108_v18  ;;  %v46_v21 = vpop.xlane.xlu1 %45 }
 0x101   :  { %v48_v20 = vmul.f32 32.0, %v31_v19 }
 0x103   :  { %v49_v22 = vsub.f32 %v48_v20, %v46_v21  ;;  %v43_v23 = vpop.xlane.xlu2 %42 }
 0x104   :  { %v47_v24 = vsub.f32 %v31_v19, %v43_v23 }
 0x105   :  { %109 = vrcp.f32 %v49_v22 }
 0x10b   :  { %v110_v25 = vpop.eup %109 }
 0x10c   :  { %v58_v26 = vmul.f32 %v110_v25, %v47_v24 }
 0x10e   :  { %v62_v27 = vsel %vm61_vm3, %v58_v26, 0.0 }
 0x10f   :  { %63 = vadd.xlane.f32.xlu2 %v62_v27 }
 0x182   :  { %v64_v28 = vpop.xlane.xlu2 %63 }
 0x183   :  { %v65_v29 = vrot.slane %v64_v28, 4 }
 0x185   :  { %v66_v30 = vadd.f32 %v65_v29, %v64_v28 }
 0x187   :  { %v67_v31 = vrot.slane %v66_v30, 2 }
 0x189   :  { %v68_v32 = vadd.f32 %v67_v31, %v66_v30 }
 0x18b   :  { %v69_v33 = vrot.slane %v68_v32, 1 }
 0x18d   :  { %v70_v34 = vadd.f32 %v69_v33, %v68_v32 }
 0x18f   :  { %99 = vpush %v70_v34 }
 0x1c0   :  { %s100_s0 = spop %99 }
 0x1c1   :  { %v72_v36 = vstv %s100_s0 }
 0x1c2   :  { %v73_v37 = vadd.f32 %v72_v36, %v60_v35 }
 0x1c4   :  { %75 = vst.msk [vmem:[#allocation2] sm:$0x1] %vm16_vm1, %v73_v37 }
 0x1cb   :  { %v79_v38 = vld [vmem:[#allocation2] sm:$0x1] }
 0x1cc   :  { %v80_v39 = vmul.f32 0.125, %v79_v38 }
 0x1ce   :  { %81 = vst.msk [vmem:[#allocation3] sm:$0x1] %vm16_vm1, %v80_v39 }
 0x1cf   :  { %92 = dma.vmem_to_hbm [thread:$0]  %s88_s13, 16, %s90_s16, [#allocation4]  }
 0x1d0   :  { %135 = dma.done.wait [#allocation4], 16  }
 0x1d1   :  { %136 = vsyncadd [#allocation4], 4294967280 }
 0x1d2   :  { %97 = vsyncpa [#allocation4], 1 }

</bundles_post_ra>
